<compile_context>
chip_gen: v6e
topology: v6e:2x2x1
jax: 0.10.0
libtpu: 0.0.40
codegen_flags: <defaults>
</compile_context>

<pallas_src>
import math
import functools

import jax
import jax.numpy as jnp
from jax import lax
from jax.experimental import pallas as pl
from jax.experimental.pallas import tpu as pltpu


def _round_up(x, m):
    return (x + m - 1) // m * m


def _heads_per_block(num_heads, head_dim, max_heads=4):
    """Largest head-block size hb <= max_heads with hb | num_heads and (hb*d) % 128 == 0."""
    for hb in range(min(num_heads, max_heads), 0, -1):
        if num_heads % hb == 0 and (hb * head_dim) % 128 == 0:
            return hb
    raise ValueError(
        f"cannot tile heads: need a divisor hb of num_heads={num_heads} with "
        f"hb*head_dim ({head_dim}) a multiple of 128")


# ----------------------------------------------------------------------------
# Kernel 1: fused QKV projection  y = x @ Wqkv_t + b   (bf16 out, resident weight)
# ----------------------------------------------------------------------------
def _qkv_proj_kernel(x_ref, w_ref, b_ref, o_ref):
    # x_ref: (tm, H) bf16 ; w_ref: (H, 3H) bf16 resident ; b_ref: (1, 3H) f32
    acc = jnp.dot(x_ref[...], w_ref[...], preferred_element_type=jnp.float32)
    o_ref[...] = (acc + b_ref[...]).astype(o_ref.dtype)


def qkv_projection(x, w_t, b, *, tm=256):
    """x: [M, H] ; w_t: [H, O] bf16 (pre-transposed, scale folded) ; b: [O] f32 -> [M, O] bf16."""
    M, H = x.shape
    O = w_t.shape[1]
    tm = min(tm, _round_up(M, 16))          # multiple of 16 for bf16 sublane packing
    Mp = _round_up(M, tm)
    xb = x.astype(jnp.bfloat16)
    if Mp != M:
        xb = jnp.pad(xb, ((0, Mp - M), (0, 0)))
    b2d = b.astype(jnp.float32).reshape(1, O)

    out = pl.pallas_call(
        _qkv_proj_kernel,
        out_shape=jax.ShapeDtypeStruct((Mp, O), jnp.bfloat16),
        grid_spec=pltpu.PrefetchScalarGridSpec(
            num_scalar_prefetch=0,
            grid=(Mp // tm,),
            in_specs=[
                pl.BlockSpec((tm, H), lambda i: (i, 0)),
                pl.BlockSpec((H, O), lambda i: (0, 0)),   # constant index -> weight stays resident
                pl.BlockSpec((1, O), lambda i: (0, 0)),
            ],
            out_specs=pl.BlockSpec((tm, O), lambda i: (i, 0)),
        ),
        compiler_params=pltpu.CompilerParams(
            dimension_semantics=("parallel",),
            vmem_limit_bytes=48 * 1024 * 1024,
        ),
    )(xb, w_t, b2d)
    return out[:M]


# ----------------------------------------------------------------------------
# Kernel 2: attention over a block of `heads` heads, indexing the [M, 3H] QKV
#           tensor directly and writing ctx into the merged-head [M, H] layout.
# ----------------------------------------------------------------------------
def _attention_kernel(mask_ref, q_ref, k_ref, v_ref, o_ref, *, heads, d):
    mask = mask_ref[0, 0].astype(jnp.float32)          # (1, S) additive mask
    q = q_ref[...]                                     # (S, heads*d) bf16, scale pre-folded
    k = k_ref[...]
    v = v_ref[...]
    outs = []
    for h in range(heads):                             # small static loop (heads <= 4)
        lo, hi = h * d, (h + 1) * d
        s = lax.dot_general(q[:, lo:hi], k[:, lo:hi],
                            (((1,), (1,)), ((), ())),
                            preferred_element_type=jnp.float32)       # (S, S)
        s = s + mask
        mx = jnp.max(s, axis=-1, keepdims=True)
        p = jnp.exp(s - mx)
        l = jnp.sum(p, axis=-1, keepdims=True)
        o = lax.dot_general(p.astype(jnp.bfloat16), v[:, lo:hi],
                            (((1,), (0,)), ((), ())),
                            preferred_element_type=jnp.float32)       # (S, d)
        outs.append(o * pl.reciprocal(l, approx=True))
    # single lane-dense (>=128-wide) store in the merged-head layout
    o_ref[...] = jnp.concatenate(outs, axis=-1).astype(o_ref.dtype)


def mha_attention_from_qkv(qkv, attn_mask, batch, seqlen, num_heads, head_dim,
                           heads_per_block):
    """qkv: [M, 3H] bf16 (Q|K|V concatenated, 1/sqrt(d) folded into Q);
    attn_mask: [B, 1, 1, S] additive -> ctx [M, H] bf16 in merged-head layout."""
    M, threeH = qkv.shape
    H = threeH // 3
    assert M == batch * seqlen
    assert seqlen % 8 == 0, "seqlen must be a multiple of 8 for (8,128) tiling"
    hb = heads_per_block
    nb = num_heads // hb                   # head-blocks per Q/K/V region
    cw = hb * head_dim                     # column-block width (multiple of 128)

    kernel = functools.partial(_attention_kernel, heads=hb, d=head_dim)
    return pl.pallas_call(
        kernel,
        out_shape=jax.ShapeDtypeStruct((M, H), jnp.bfloat16),
        grid_spec=pltpu.PrefetchScalarGridSpec(
            num_scalar_prefetch=0,
            grid=(batch, nb),
            in_specs=[
                pl.BlockSpec((1, 1, 1, seqlen), lambda b, p: (b, 0, 0, 0)),
                # direct column-block indexing into [M, 3H]: Q at block p,
                # K at nb + p, V at 2*nb + p; row block = batch index.
                pl.BlockSpec((seqlen, cw), lambda b, p: (b, p)),
                pl.BlockSpec((seqlen, cw), lambda b, p, nb=nb: (b, nb + p)),
                pl.BlockSpec((seqlen, cw), lambda b, p, nb=nb: (b, 2 * nb + p)),
            ],
            out_specs=pl.BlockSpec((seqlen, cw), lambda b, p: (b, p)),
        ),
        compiler_params=pltpu.CompilerParams(
            dimension_semantics=("parallel", "parallel"),
            vmem_limit_bytes=32 * 1024 * 1024,
        ),
    )(attn_mask.astype(jnp.float32), qkv, qkv, qkv)


# ----------------------------------------------------------------------------
# Kernel 3: BertSelfOutput = dense + bias + residual add + LayerNorm (eval mode)
# ----------------------------------------------------------------------------
def _out_dense_ln_kernel(ctx_ref, res_ref, w_ref, b_ref, g_ref, bt_ref, o_ref, *, eps):
    # ctx_ref: (tm, H) bf16 ; w_ref: (H, H) bf16 resident ; res_ref: (tm, H) f32
    y = jnp.dot(ctx_ref[...], w_ref[...], preferred_element_type=jnp.float32)
    h = y + b_ref[...] + res_ref[...].astype(jnp.float32)
    mu = jnp.mean(h, axis=-1, keepdims=True)
    c = h - mu
    var = jnp.mean(c * c, axis=-1, keepdims=True)
    o = c * lax.rsqrt(var + eps) * g_ref[...] + bt_ref[...]
    o_ref[...] = o.astype(o_ref.dtype)


def self_output_dense_ln(ctx, residual, w_t, b, gamma, beta, *, tm=512, eps=1e-12):
    """ctx: [M, H] bf16 ; residual: [M, H] ; w_t: [H, H] bf16 (pre-transposed) -> [M, H]."""
    M, H = ctx.shape
    tm = min(tm, _round_up(M, 16))
    Mp = _round_up(M, tm)
    ctx_p = ctx if Mp == M else jnp.pad(ctx, ((0, Mp - M), (0, 0)))
    res_f = residual.astype(jnp.float32)
    res_p = res_f if Mp == M else jnp.pad(res_f, ((0, Mp - M), (0, 0)))

    out = pl.pallas_call(
        functools.partial(_out_dense_ln_kernel, eps=eps),
        out_shape=jax.ShapeDtypeStruct((Mp, H), residual.dtype),
        grid_spec=pltpu.PrefetchScalarGridSpec(
            num_scalar_prefetch=0,
            grid=(Mp // tm,),
            in_specs=[
                pl.BlockSpec((tm, H), lambda i: (i, 0)),
                pl.BlockSpec((tm, H), lambda i: (i, 0)),
                pl.BlockSpec((H, H), lambda i: (0, 0)),   # resident weight
                pl.BlockSpec((1, H), lambda i: (0, 0)),
                pl.BlockSpec((1, H), lambda i: (0, 0)),
                pl.BlockSpec((1, H), lambda i: (0, 0)),
            ],
            out_specs=pl.BlockSpec((tm, H), lambda i: (i, 0)),
        ),
        compiler_params=pltpu.CompilerParams(
            dimension_semantics=("parallel",),
            vmem_limit_bytes=48 * 1024 * 1024,
        ),
    )(ctx_p, res_p, w_t,
      b.reshape(1, H).astype(jnp.float32),
      gamma.reshape(1, H).astype(jnp.float32),
      beta.reshape(1, H).astype(jnp.float32))
    return out[:M]


# ----------------------------------------------------------------------------
# Top-level FastUnpadBertAttention forward (eval mode)
# ----------------------------------------------------------------------------
def fast_unpad_bert_attention(input_tensor, attention_mask, seqlen, batch, params, *, num_heads):
    """input_tensor: [batch*seqlen, H]; attention_mask: [batch, 1, 1, seqlen] additive.

    Returns LayerNorm(SelfAttention(x) @ Wo^T + bo + x) with dropout disabled (eval mode).
    """
    M, H = input_tensor.shape
    assert M == batch * seqlen
    d = H // num_heads
    hb = _heads_per_block(num_heads, d)

    # Fold the 1/sqrt(d) softmax scale into the Q rows of Wqkv / bqkv (in f32, before the
    # bf16 cast) and pre-transpose the static weights once to [H, O] so the kernels feed
    # the MXU a plain contraction (no per-step weight transpose).
    scale = 1.0 / math.sqrt(d)
    wqkv = params["wqkv"].astype(jnp.float32)
    bqkv = params["bqkv"].astype(jnp.float32)
    wqkv = wqkv.at[:H, :].multiply(scale)
    bqkv = bqkv.at[:H].multiply(scale)
    wqkv_t = wqkv.T.astype(jnp.bfloat16)               # [H, 3H]
    wo_t = params["wo"].astype(jnp.float32).T.astype(jnp.bfloat16)   # [H, H]

    # 1) fused QKV projection, bf16 [M, 3H]
    qkv = qkv_projection(input_tensor, wqkv_t, bqkv)

    # 2) attention: reads Q/K/V column blocks straight out of [M, 3H], writes ctx [M, H] bf16
    ctx = mha_attention_from_qkv(qkv, attention_mask, batch, seqlen, num_heads, d, hb)

    # 3) output dense + residual + LayerNorm
    return self_output_dense_ln(ctx, input_tensor, wo_t,
                                params["bo"], params["ln_gamma"], params["ln_beta"])


# ----------------------------------------------------------------------------
# Self-test
# ----------------------------------------------------------------------------
def _reference(x, mask, B, S, nH, p, eps=1e-12):
    H = x.shape[1]
    d = H // nH
    qkv = x @ p["wqkv"].T + p["bqkv"]
    q, k, v = jnp.split(qkv, 3, axis=-1)

    def heads(t):
        return jnp.transpose(t.reshape(B, S, nH, d), (0, 2, 1, 3))

    q, k, v = heads(q), heads(k), heads(v)
    s = jnp.einsum("bhqd,bhkd->bhqk", q, k) / math.sqrt(d) + mask
    pmat = jax.nn.softmax(s, axis=-1)
    ctx = jnp.einsum("bhqk,bhkd->bhqd", pmat, v)
    ctx = jnp.transpose(ctx, (0, 2, 1, 3)).reshape(B * S, H)
    h = ctx @ p["wo"].T + p["bo"] + x
    mu = jnp.mean(h, axis=-1, keepdims=True)
    var = jnp.mean((h - mu) ** 2, axis=-1, keepdims=True)
    return (h - mu) * lax.rsqrt(var + eps) * p["ln_gamma"] + p["ln_beta"]


if __name__ == "__main__":
    B, S, H, NH = 2, 8, 128, 2
    M = B * S

    key = jax.random.PRNGKey(0)
    ks = jax.random.split(key, 7)
    x = jax.random.normal(ks[0], (M, H), dtype=jnp.float32)
    wqkv = jax.random.normal(ks[1], (3 * H, H), dtype=jnp.float32) * 0.02
    bqkv = jax.random.normal(ks[2], (3 * H,), dtype=jnp.float32) * 0.02
    wo = jax.random.normal(ks[3], (H, H), dtype=jnp.float32) * 0.02
    bo = jax.random.normal(ks[4], (H,), dtype=jnp.float32) * 0.02
    gamma = 1.0 + 0.1 * jax.random.normal(ks[5], (H,), dtype=jnp.float32)
    beta = 0.1 * jax.random.normal(ks[6], (H,), dtype=jnp.float32)

    # additive attention mask: last 2 key positions of the second sequence masked out
    mask = jnp.zeros((B, 1, 1, S), dtype=jnp.float32).at[1, :, :, 6:].set(-10000.0)

    params = dict(wqkv=wqkv, bqkv=bqkv, wo=wo, bo=bo, ln_gamma=gamma, ln_beta=beta)

    out = fast_unpad_bert_attention(x, mask, S, B, params, num_heads=NH)
    out = jax.block_until_ready(out)

    ref = _reference(x, mask, B, S, NH, params)
    assert out.shape == (M, H)
    assert jnp.allclose(out, ref, atol=2e-2, rtol=2e-2), float(jnp.max(jnp.abs(out - ref)))

    print("KERNEL_OK")
</pallas_src>

<mosaic_0001>
module attributes {stable_mosaic.version = 11 : i64} {
  func.func @_qkv_proj_kernel(%arg0: i32, %arg1: memref<16x128xbf16, #tpu.memory_space<vmem>>, %arg2: memref<128x384xbf16, #tpu.memory_space<vmem>>, %arg3: memref<1x384xf32, #tpu.memory_space<vmem>>, %arg4: memref<16x384xbf16, #tpu.memory_space<vmem>>) attributes {dimension_semantics = [#tpu.dimension_semantics<parallel>], iteration_bounds = array<i64: 1>, scalar_prefetch = 0 : i64, scratch_operands = 0 : i64, tpu.core_type = #tpu.core_type<tc>, window_params = [{transform_indices = @transform_0, window_bounds = array<i64: 16, 128>}, {pipeline_mode = #tpu.pipeline_mode<synchronous>, transform_indices = @transform_1, window_bounds = array<i64: 128, 384>}, {pipeline_mode = #tpu.pipeline_mode<synchronous>, transform_indices = @transform_2, window_bounds = array<i64: 1, 384>}, {transform_indices = @transform_3, window_bounds = array<i64: 16, 384>}]} {
    %c0 = arith.constant 0 : index
    %c0_0 = arith.constant 0 : index
    %0 = vector.load %arg1[%c0, %c0_0] : memref<16x128xbf16, #tpu.memory_space<vmem>>, vector<16x128xbf16>
    %c0_1 = arith.constant 0 : index
    %c0_2 = arith.constant 0 : index
    %1 = vector.load %arg2[%c0_1, %c0_2] : memref<128x384xbf16, #tpu.memory_space<vmem>>, vector<128x384xbf16>
    %cst = arith.constant dense<0.000000e+00> : vector<16x384xf32>
    %2 = tpu.matmul %0, %1, %cst {dimension_numbers = #tpu.dot_dimension_numbers<[1], [0], [0], [1], [0, 0, 1, 1], [], []>} : vector<16x128xbf16>, vector<128x384xbf16>, vector<16x384xf32> -> vector<16x384xf32>
    %c0_3 = arith.constant 0 : index
    %c0_4 = arith.constant 0 : index
    %3 = vector.load %arg3[%c0_3, %c0_4] : memref<1x384xf32, #tpu.memory_space<vmem>>, vector<1x384xf32>
    %4 = vector.broadcast %3 : vector<1x384xf32> to vector<16x384xf32>
    %5 = arith.addf %2, %4 : vector<16x384xf32>
    %6 = arith.truncf %5 : vector<16x384xf32> to vector<16x384xbf16>
    %c0_5 = arith.constant 0 : index
    %c0_6 = arith.constant 0 : index
    %7 = vector.load %arg4[%c0_5, %c0_6] : memref<16x384xbf16, #tpu.memory_space<vmem>>, vector<16x384xbf16>
    tpu.vector_store %arg4[%c0_5, %c0_6], %6 {strides = array<i32>} : memref<16x384xbf16, #tpu.memory_space<vmem>>, vector<16x384xbf16>,
    return
  }
  func.func @transform_0(%arg0: i32) -> (i32, i32) {
    %c0_i32 = arith.constant 0 : i32
    %c0_i32_0 = arith.constant 0 : i32
    return %arg0, %c0_i32 : i32, i32
  }
  func.func @transform_1(%arg0: i32) -> (i32, i32) {
    %c0_i32 = arith.constant 0 : i32
    %c0_i32_0 = arith.constant 0 : i32
    %c0_i32_1 = arith.constant 0 : i32
    return %c0_i32, %c0_i32_0 : i32, i32
  }
  func.func @transform_2(%arg0: i32) -> (i32, i32) {
    %c0_i32 = arith.constant 0 : i32
    %c0_i32_0 = arith.constant 0 : i32
    %c0_i32_1 = arith.constant 0 : i32
    return %c0_i32, %c0_i32_0 : i32, i32
  }
  func.func @transform_3(%arg0: i32) -> (i32, i32) {
    %c0_i32 = arith.constant 0 : i32
    %c0_i32_0 = arith.constant 0 : i32
    return %arg0, %c0_i32 : i32, i32
  }
}

</mosaic_0001>

<bundles_post_ra>
// kernel: tpu_custom_call.1
= control target key start
LH: loop header
LB: loop body
LE: loop exit
PB: predicated region body
PF: predicated region fallthrough
CT: control target
= control target key end

     0   :  { %8 = vsyncpa [#allocation3], 0  ;;  %s574_s0 = inlined_call_operand.hbm [shape: bf16[16,128], index: 0, kind: input, shape index: {}]   ;;  %s575_s1 = inlined_call_operand.hbm [shape: bf16[128,384], index: 1, kind: input, shape index: {}]   ;;  %s576_s2 = inlined_call_operand.vmem [shape: f32[1,384], index: 2, kind: input, shape index: {}]   ;;  %s577_s3 = inlined_call_operand.hbm [shape: bf16[16,384], index: 3, kind: output, shape index: {}]  }
   0x1   :  { %9 = vsyncpa [#allocation6], 0 }
   0x2   :  { %10 = vsyncpa [#allocation4], 0  ;;  %s526_s12 = smov [#allocation2]  }
   0x3   :  { %s16_s13 = sshll.u32 %s526_s12, 4  ;;  %s17_s13 = int_to_ptr.vmem [resolvable:$true] %s16_s13 }
   0x4   :  { %s468_s14 = scalar_lea.vmem %s17_s13, 128  ;;  %p473_p1 = scmp.lt.s32.totalorder %s17_s13, %s17_s13 }
   0x5   :  { %p469_p0 = scmp.ne.s32.totalorder %s17_s13, %s468_s14  ;;  %p474_p2 = scmp.lt.s32.totalorder %s468_s14, %s468_s14 }
   0x7   :  { %p475_p3 = por %p474_p2, %p473_p1 }
   0x9   :  { %p476_p4 = pnand %p475_p3, %p469_p0 }
   0xb   :  { %479 = shalt.err (!%p476_p4)
}
   0xc   :  { %s527_s15 = smov 64   ;;  %s528_s16 = smov 4  }
   0xd   :  { %22 = dma.hbm_to_vmem [thread:$0]  %s574_s0, 128, %s17_s13, [#allocation3], %s527_s15, %s527_s15, %s528_s16  }
   0xe   :  { %s529_s19 = smov [#allocation5]  }
   0xf   :  { %s28_s20 = sshll.u32 %s529_s19, 4  ;;  %s29_s20 = int_to_ptr.vmem [resolvable:$true] %s28_s20 }
  0x10   :  { %s488_s21 = scalar_lea.vmem %s29_s20, 3072  ;;  %p493_p6 = scmp.lt.s32.totalorder %s29_s20, %s29_s20 }
  0x11   :  { %p489_p5 = scmp.ne.s32.totalorder %s29_s20, %s488_s21  ;;  %p494_p7 = scmp.lt.s32.totalorder %s488_s21, %s488_s21 }
  0x13   :  { %p495_p8 = por %p494_p7, %p493_p6 }
  0x15   :  { %p496_p9 = pnand %p495_p8, %p489_p5 }
  0x17   :  { %499 = shalt.err (!%p496_p9)
}
  0x18   :  { %s530_s22 = smov 192   ;;  %s531_s23 = smov 12  }
  0x19   :  { %34 = dma.hbm_to_vmem [thread:$0]  %s575_s1, 3072, %s29_s20, [#allocation6], %s530_s22, %s530_s22, %s531_s23  }
  0x1a   :  { %520 = dma.done.wait [#allocation3], 128  }
  0x1b   :  { %521 = vsyncadd [#allocation3], 4294967168 }
  0x1c   :  { %522 = dma.done.wait [#allocation6], 3072  }
  0x1d   :  { %523 = vsyncadd [#allocation6], 4294964224  ;;  %v532_v0 = vmov 0.0   ;;  %vm533_vm0 = vmmov 0   ;;  %v534_v1 = vmov 0   ;;  %v459_v26 = vld [vmem:[#allocation2] sm:$0xff]   ;;  %v80_v27 = vlaneseq }
  0x1e   :  { %397 = vmatprep.subr.bf16.mxu1 %v532_v0  ;;  %413 = vmatprep.mubr.msk.bf16.mxu1 %vm533_vm0, %v532_v0  ;;  %v427_v2 = vld [vmem:[#allocation5 + $0xac] ss:$12 sps:$4 sm:$0xff]   ;;  %v429_v3 = vld [vmem:[#allocation5 + $0xb0] ss:$12 sps:$4 sm:$0xff]   ;;  %v430_v4 = vld [vmem:[#allocation5 + $0xa8] ss:$12 sps:$4 sm:$0xff]  }
  0x1f   :  { %261 = vmatprep.mubr.bf16.mxu0 %v534_v1  ;;  %229 = vmatprep.subr.bf16.mxu0 %v427_v2  ;;  %v431_v5 = vld [vmem:[#allocation5 + $0x94] ss:$12 sps:$4 sm:$0xff]   ;;  %v433_v6 = vld [vmem:[#allocation5 + $0x98] ss:$12 sps:$4 sm:$0xff]   ;;  %v434_v7 = vld [vmem:[#allocation5 + $0x90] ss:$12 sps:$4 sm:$0xff]  }
  0x20   :  { %398 = vmatpush3.bf16.msra.mxu1 %v429_v3  ;;  %230 = vmatpush1.bf16.msra.mxu0 %v430_v4  ;;  %v435_v8 = vld [vmem:[#allocation5 + $0x7c] ss:$12 sps:$4 sm:$0xff]   ;;  %v437_v9 = vld [vmem:[#allocation5 + $0x80] ss:$12 sps:$4 sm:$0xff]   ;;  %v438_v10 = vld [vmem:[#allocation5 + $0x78] ss:$12 sps:$4 sm:$0xff]  }
  0x21   :  { %399 = vmatprep.subr.bf16.mxu1 %v532_v0  ;;  %231 = vmatprep.subr.bf16.mxu0 %v431_v5  ;;  %v439_v11 = vld [vmem:[#allocation5 + $0x64] ss:$12 sps:$4 sm:$0xff]   ;;  %v441_v12 = vld [vmem:[#allocation5 + $0x68] ss:$12 sps:$4 sm:$0xff]   ;;  %v442_v13 = vld [vmem:[#allocation5 + $0x60] ss:$12 sps:$4 sm:$0xff]  }
  0x22   :  { %v443_v14 = vld [vmem:[#allocation5 + $0x4c] ss:$12 sps:$4 sm:$0xff]   ;;  %v445_v15 = vld [vmem:[#allocation5 + $0x50] ss:$12 sps:$4 sm:$0xff]   ;;  %v446_v16 = vld [vmem:[#allocation5 + $0x48] ss:$12 sps:$4 sm:$0xff]  }
  0x23   :  { %v447_v17 = vld [vmem:[#allocation5 + $0x34] ss:$12 sps:$4 sm:$0xff]   ;;  %v449_v18 = vld [vmem:[#allocation5 + $0x38] ss:$12 sps:$4 sm:$0xff]   ;;  %v450_v19 = vld [vmem:[#allocation5 + $0x30] ss:$12 sps:$4 sm:$0xff]  }
  0x24   :  { %400 = vmatpush3.bf16.msra.mxu1 %v433_v6  ;;  %232 = vmatpush1.bf16.msra.mxu0 %v434_v7  ;;  %v451_v20 = vld [vmem:[#allocation5 + $0x1c] ss:$12 sps:$4 sm:$0xff]   ;;  %v453_v21 = vld [vmem:[#allocation5 + $0x20] ss:$12 sps:$4 sm:$0xff]   ;;  %v454_v22 = vld [vmem:[#allocation5 + $0x18] ss:$12 sps:$4 sm:$0xff]  }
  0x25   :  { %401 = vmatprep.subr.bf16.mxu1 %v532_v0  ;;  %233 = vmatprep.subr.bf16.mxu0 %v435_v8  ;;  %v455_v23 = vld [vmem:[#allocation5 + $0x4] ss:$12 sps:$4 sm:$0xff]   ;;  %v457_v24 = vld [vmem:[#allocation5 + $0x8] ss:$12 sps:$4 sm:$0xff]   ;;  %v458_v25 = vld [vmem:[#allocation5] ss:$12 sps:$4 sm:$0xff]  }
  0x26   :  { %v81_v28 = vshrl.u32 %v80_v27, 7  ;;  %v78_v30 = vld [vmem:[%s576_s2] sm:$0x7]  ;;  %s535_s2 = smov [#allocation7]  }
  0x27   :  { %s342_s26 = sshll.u32 %s535_s2, 4  ;;  %s343_s26 = int_to_ptr.vmem [resolvable:$true] %s342_s26 }
  0x28   :  { %402 = vmatpush3.bf16.msra.mxu1 %v437_v9  ;;  %234 = vmatpush1.bf16.msra.mxu0 %v438_v10  ;;  %v90_v29 = vsub.s32 2, %v81_v28  ;;  %v82_v31 = vsub.s32 0, %v81_v28  ;;  %v86_v32 = vsub.s32 1, %v81_v28  ;;  %s500_s27 = scalar_lea.vmem %s343_s26, 384  ;;  %p505_p11 = scmp.lt.s32.totalorder %s343_s26, %s343_s26 }
  0x29   :  { %403 = vmatprep.subr.bf16.mxu1 %v532_v0  ;;  %235 = vmatprep.subr.bf16.mxu0 %v439_v11  ;;  %p501_p10 = scmp.ne.s32.totalorder %s343_s26, %s500_s27  ;;  %p506_p12 = scmp.lt.s32.totalorder %s500_s27, %s500_s27 }
  0x2a   :  { %v91_v33 = vrot.slane %v78_v30, %v90_v29  ;;  %v83_v35 = vrot.slane %v78_v30, %v82_v31  ;;  %v87_v36 = vrot.slane %v78_v30, %v86_v32 }
  0x2b   :  { %p507_p13 = por %p506_p12, %p505_p11 }
  0x2c   :  { %404 = vmatpush3.bf16.msra.mxu1 %v441_v12  ;;  %236 = vmatpush1.bf16.msra.mxu0 %v442_v13 }
  0x2d   :  { %405 = vmatprep.subr.bf16.mxu1 %v532_v0  ;;  %237 = vmatprep.subr.bf16.mxu0 %v443_v14  ;;  %p508_p0 = pnand %p507_p13, %p501_p10 }
  0x30   :  { %406 = vmatpush3.bf16.msra.mxu1 %v445_v15  ;;  %238 = vmatpush1.bf16.msra.mxu0 %v446_v16 }
  0x31   :  { %407 = vmatprep.subr.bf16.mxu1 %v532_v0  ;;  %239 = vmatprep.subr.bf16.mxu0 %v447_v17 }
  0x34   :  { %408 = vmatpush3.bf16.msra.mxu1 %v449_v18  ;;  %240 = vmatpush1.bf16.msra.mxu0 %v450_v19 }
  0x35   :  { %409 = vmatprep.subr.bf16.mxu1 %v532_v0  ;;  %241 = vmatprep.subr.bf16.mxu0 %v451_v20 }
  0x38   :  { %410 = vmatpush3.bf16.msra.mxu1 %v453_v21  ;;  %242 = vmatpush1.bf16.msra.mxu0 %v454_v22 }
  0x39   :  { %411 = vmatprep.subr.bf16.mxu1 %v532_v0  ;;  %243 = vmatprep.subr.bf16.mxu0 %v455_v23 }
  0x3c   :  { %412 = vmatpush3.bf16.msra.mxu1 %v457_v24  ;;  %244 = vmatpush1.bf16.msra.mxu0 %v458_v25 }
  0x3f   :  { %414 = vmatmul.mubr.bf16.vlgmr.msra.gmra.mxu1 %v459_v26  ;;  %262 = vmatmul.mubr.bf16.vlgmr.msra.gmra.mxu0 %v459_v26 }
  0xff   :  { %v306_v34 = vpop.f32.mrf.mxu1  ;;  %v263_v38 = vpop.f32.mrf.mxu0 }
 0x100   :  { %v307_v37 = vadd.f32 %v306_v34, %v91_v33  ;;  %v264_v42 = vadd.f32 %v263_v38, %v83_v35 }
 0x101   :  { %v415_v39 = vpop.f32.mrf.mxu1  ;;  %v265_v41 = vpop.f32.mrf.mxu0 }
 0x102   :  { %v385_v40 = vpack.c.bf16 %v307_v37, %v307_v37  ;;  %v266_v43 = vadd.f32 %v265_v41, %v87_v36 }
 0x103   :  { %v309_v44 = vpop.f32.mrf.mxu1  ;;  %v267_v46 = vpop.f32.mrf.mxu0 }
 0x104   :  { %334 = vst [vmem:[#allocation7 + $0x8] sm:$0xf] %v385_v40  ;;  %v310_v45 = vadd.f32 %v309_v44, %v91_v33  ;;  %v384_v47 = vpack.c.bf16 %v266_v43, %v264_v42  ;;  %v268_v51 = vadd.f32 %v267_v46, %v83_v35 }
 0x105   :  { %v416_v48 = vpop.f32.mrf.mxu1  ;;  %v269_v50 = vpop.f32.mrf.mxu0 }
 0x106   :  { %v387_v49 = vpack.c.bf16 %v310_v45, %v310_v45  ;;  %333 = vst [vmem:[#allocation7] sm:$0xff] %v384_v47  ;;  %v270_v52 = vadd.f32 %v269_v50, %v87_v36 }
 0x108   :  { %336 = vst [vmem:[#allocation7 + $0x14] sm:$0xf] %v387_v49  ;;  %v386_v53 = vpack.c.bf16 %v270_v52, %v268_v51 }
 0x10a   :  { %335 = vst [vmem:[#allocation7 + $0xc] sm:$0xff] %v386_v53 }
 0x10b   :  { %511 = shalt.err (!%p508_p0)
}
 0x10c   :  { %348 = dma.vmem_to_hbm [thread:$0]  %s343_s26, 384, %s577_s3, [#allocation4], %s530_s22, %s530_s22, %s531_s23  }
 0x10d   :  { %524 = dma.done.wait [#allocation4], 384  }
 0x10e   :  { %525 = vsyncadd [#allocation4], 4294966912 }
 0x10f   :  { %352 = vsyncpa [#allocation3], 1 }
 0x110   :  { %353 = vsyncpa [#allocation6], 1 }
 0x111   :  { %354 = vsyncpa [#allocation4], 1 }

</bundles_post_ra>
